<compile_context>
chip_gen: v7x
topology: tpu7x:2x2x1
jax: 0.10.0
libtpu: 0.0.40
codegen_flags: <defaults>
</compile_context>

<pallas_src>
import functools

import jax
import jax.numpy as jnp
from jax.experimental import pallas as pl
from jax.experimental.pallas import tpu as pltpu

LANE = 128
SUBLANE = 8


def _round_up(x, m):
    return (x + m - 1) // m * m


def _cdiv(a, b):
    return (a + b - 1) // b


def _single_buffered_spec(block_shape, index_map):
    """BlockSpec with one VMEM buffer (constant index_map => resident operand)."""
    try:
        return pl.BlockSpec(block_shape, index_map, pipeline_mode=pl.Buffered(1))
    except TypeError:
        # Older BlockSpec without pipeline_mode: fall back to default buffering.
        return pl.BlockSpec(block_shape, index_map)


def _vmem_budget_bytes():
    """Physical VMEM of this chip minus headroom for compiler-internal scratch."""
    cap = 64 << 20  # conservative default (v7x per-TC VMEM)
    try:
        cap = int(pltpu.get_tpu_info().vmem_capacity_bytes)
    except Exception:
        pass
    # v7x: 64 MiB -> ~52 MiB budget; v5e/v6e: 128 MiB -> ~112 MiB budget.
    return cap - max(12 << 20, cap // 8)


# --------------------------------------------------------------------------
# Kernels
# --------------------------------------------------------------------------
def _mlp_resident_kernel(x_ref, w1_ref, b1_ref, w2_ref, b2_ref, y_ref, z_ref):
    # encode: z = relu(x @ W1 + b1), f32 accumulation on the MXU.
    h = jnp.dot(x_ref[...], w1_ref[...], preferred_element_type=jnp.float32)
    h = h + b1_ref[...].astype(jnp.float32)          # (1, hid_p) broadcasts over rows
    z = jnp.maximum(h, 0.0)
    z_lo = z.astype(z_ref.dtype)                     # the same z PyTorch feeds into C
    z_ref[...] = z_lo
    # classify: y = z @ W2 + b2 (bf16 weights run on the bf16 MXU; f32 acc).
    y = jnp.dot(z_lo.astype(w2_ref.dtype), w2_ref[...],
                preferred_element_type=jnp.float32)
    y = y + b2_ref[...].astype(jnp.float32)
    y_ref[...] = y.astype(y_ref.dtype)


def _mlp_hid_tiled_kernel(x_ref, w1_ref, b1_ref, w2_ref, b2_ref, y_ref, z_ref,
                          acc_ref):
    # Hidden dim tiled along grid axis 1 ("arbitrary"); y accumulated in f32.
    k = pl.program_id(1)

    @pl.when(k == 0)
    def _():
        acc_ref[...] = jnp.zeros_like(acc_ref)

    h = jnp.dot(x_ref[...], w1_ref[...], preferred_element_type=jnp.float32)
    h = h + b1_ref[...].astype(jnp.float32)
    z = jnp.maximum(h, 0.0)
    z_lo = z.astype(z_ref.dtype)
    z_ref[...] = z_lo
    acc_ref[...] += jnp.dot(z_lo.astype(w2_ref.dtype), w2_ref[...],
                            preferred_element_type=jnp.float32)

    @pl.when(k == pl.num_programs(1) - 1)
    def _():
        y_ref[...] = (acc_ref[...]
                      + b2_ref[...].astype(jnp.float32)).astype(y_ref.dtype)


# --------------------------------------------------------------------------
# Wrappers
# --------------------------------------------------------------------------
def prepare_params(w1, b1, w2, b2):
    """Zero-pad weights/biases to lane (128) multiples ONCE, outside the
    per-call path (no per-call HBM round-trip to pad weights)."""
    in_dim, hid_dim = w1.shape
    out_dim = w2.shape[1]
    in_p, hid_p, out_p = (_round_up(d, LANE) for d in (in_dim, hid_dim, out_dim))
    w1p = jnp.pad(w1, ((0, in_p - in_dim), (0, hid_p - hid_dim)))
    b1p = jnp.pad(jnp.reshape(b1, (1, -1)), ((0, 0), (0, hid_p - hid_dim)))
    w2p = jnp.pad(w2, ((0, hid_p - hid_dim), (0, out_p - out_dim)))
    b2p = jnp.pad(jnp.reshape(b2, (1, -1)), ((0, 0), (0, out_p - out_dim)))
    return (w1p, b1p, w2p, b2p), (hid_dim, out_dim)


@functools.partial(
    jax.jit,
    static_argnames=("hid_dim", "out_dim", "block_m", "force_hid_tiling"))
def mlp_forward(x, w1p, b1p, w2p, b2p, *, hid_dim, out_dim, block_m=None,
                force_hid_tiling=False):
    """x: (B, in_dim, 1) -> (y: (B, out_dim), z: (B, hid_dim)).

    w1p/b1p/w2p/b2p are the 128-padded parameters from prepare_params().
    """
    x2d = jnp.squeeze(x, axis=-1)                    # torch.squeeze(x, dim=-1)
    B, in_dim = x2d.shape
    in_p, hid_p = w1p.shape
    out_p = w2p.shape[1]
    dt = x2d.dtype
    itemsize = jnp.dtype(dt).itemsize
    w_itemsize = jnp.dtype(w1p.dtype).itemsize

    budget = _vmem_budget_bytes()

    # Batch rows: pad only to the sublane multiple of 8 (<=7 rows); the grid
    # uses cdiv, so a partial final block is handled by masked writes.
    b8 = _round_up(max(B, 1), SUBLANE)

    def resident_fit(bm):
        weights = w_itemsize * (in_p * hid_p + hid_p * out_p + hid_p + out_p)
        tiles = 2 * itemsize * bm * (in_p + hid_p + out_p)    # 2x-buffered x/y/z
        interm = 4 * bm * (hid_p + out_p)                     # f32 h/z/y in flight
        return weights + tiles + interm <= budget

    def hid_tiled_fit(bm, bh):
        moving = 2 * w_itemsize * (in_p * bh + bh * out_p + bh)  # W1/W2/b1 tiles x2
        tiles = 2 * itemsize * bm * (in_p + bh + out_p)          # x/z/y tiles x2
        fixed = w_itemsize * out_p + 4 * bm * out_p              # b2 + f32 acc
        interm = 4 * bm * (bh + out_p)
        return moving + tiles + fixed + interm <= budget

    # --- batch tile selection ------------------------------------------------
    if block_m is None:
        if b8 <= 256:
            block_m = b8
        elif b8 <= 512:
            # >= 2 grid steps so the "parallel" batch axis uses both v7x TCs.
            block_m = _round_up(_cdiv(b8, 2), SUBLANE)
        else:
            # Bigger tiles amortize the ~0.35us/step overhead (measured 63%->85%
            # of HBM roofline going 256->512 on v6e) when VMEM allows.
            block_m = 512 if resident_fit(512) else 256
    block_m = max(SUBLANE, _round_up(block_m, SUBLANE))

    use_resident = (not force_hid_tiling) and resident_fit(block_m)
    if (not use_resident) and (not force_hid_tiling):
        for bm in (256, 128):        # shrink batch tile before abandoning
            if bm < block_m and resident_fit(bm):
                block_m, use_resident = bm, True
                break

    # --- input padding (columns + <=7 rows only) -----------------------------
    if in_p != in_dim or b8 != B:
        x_pad = jnp.pad(x2d, ((0, b8 - B), (0, in_p - in_dim)))
    else:
        x_pad = x2d

    grid_m = _cdiv(b8, block_m)

    cost = pl.CostEstimate(
        flops=2 * b8 * (in_p * hid_p + hid_p * out_p),
        transcendentals=0,
        bytes_accessed=itemsize * b8 * (in_p + hid_p + out_p)
        + w_itemsize * (in_p * hid_p + hid_p * out_p),
    )
    out_shape = (
        jax.ShapeDtypeStruct((b8, out_p), dt),
        jax.ShapeDtypeStruct((b8, hid_p), dt),
    )

    if use_resident:
        # Weight-stationary path: W1/W2/b1/b2 single-buffered and VMEM-resident,
        # x/y/z tiles double-buffered over the batch grid axis.
        needed = (w_itemsize * (in_p * hid_p + hid_p * out_p + hid_p + out_p)
                  + 2 * itemsize * block_m * (in_p + hid_p + out_p)
                  + 4 * block_m * (hid_p + out_p))
        vmem_limit = int(min(max(int(needed * 1.25), 16 << 20), budget))
        y_pad, z_pad = pl.pallas_call(
            _mlp_resident_kernel,
            out_shape=out_shape,
            grid_spec=pltpu.PrefetchScalarGridSpec(
                num_scalar_prefetch=0,
                grid=(grid_m,),
                in_specs=[
                    pl.BlockSpec((block_m, in_p), lambda i: (i, 0)),          # x tile
                    _single_buffered_spec((in_p, hid_p), lambda i: (0, 0)),   # W1
                    _single_buffered_spec((1, hid_p), lambda i: (0, 0)),      # b1
                    _single_buffered_spec((hid_p, out_p), lambda i: (0, 0)),  # W2
                    _single_buffered_spec((1, out_p), lambda i: (0, 0)),      # b2
                ],
                out_specs=[
                    pl.BlockSpec((block_m, out_p), lambda i: (i, 0)),         # y tile
                    pl.BlockSpec((block_m, hid_p), lambda i: (i, 0)),         # z tile
                ],
            ),
            compiler_params=pltpu.CompilerParams(
                dimension_semantics=("parallel",),     # batch axis -> megacore
                vmem_limit_bytes=vmem_limit,
            ),
            cost_estimate=cost,
        )(x_pad, w1p, b1p, w2p, b2p)
    else:
        # Hid-dim tiling fallback for weights that do not fit VMEM (e.g. v7x).
        units = hid_p // LANE
        block_h = LANE
        for d in range(units, 0, -1):
            if units % d == 0 and hid_tiled_fit(block_m, d * LANE):
                block_h = d * LANE
                break
        # TODO(synk): extremely wide in/out dims would additionally need
        # in/out-dim tiling; only the hidden dim is tiled here.
        grid_k = hid_p // block_h
        needed = (2 * w_itemsize * (in_p * block_h + block_h * out_p + block_h)
                  + 2 * itemsize * block_m * (in_p + block_h + out_p)
                  + w_itemsize * out_p + 4 * block_m * out_p
                  + 4 * block_m * (block_h + out_p))
        vmem_limit = int(min(max(int(needed * 1.25), 16 << 20), budget))
        y_pad, z_pad = pl.pallas_call(
            _mlp_hid_tiled_kernel,
            out_shape=out_shape,
            grid_spec=pltpu.PrefetchScalarGridSpec(
                num_scalar_prefetch=0,
                grid=(grid_m, grid_k),
                in_specs=[
                    pl.BlockSpec((block_m, in_p), lambda i, k: (i, 0)),       # x
                    pl.BlockSpec((in_p, block_h), lambda i, k: (0, k)),       # W1 tile
                    pl.BlockSpec((1, block_h), lambda i, k: (0, k)),          # b1 tile
                    pl.BlockSpec((block_h, out_p), lambda i, k: (k, 0)),      # W2 tile
                    _single_buffered_spec((1, out_p), lambda i, k: (0, 0)),   # b2
                ],
                out_specs=[
                    pl.BlockSpec((block_m, out_p), lambda i, k: (i, 0)),      # y (acc)
                    pl.BlockSpec((block_m, block_h), lambda i, k: (i, k)),    # z tile
                ],
                scratch_shapes=[pltpu.VMEM((block_m, out_p), jnp.float32)],
            ),
            compiler_params=pltpu.CompilerParams(
                dimension_semantics=("parallel", "arbitrary"),
                vmem_limit_bytes=vmem_limit,
            ),
            cost_estimate=cost,
        )(x_pad, w1p, b1p, w2p, b2p)

    # Slice padding off (zero-padded weights/biases guarantee exactness).
    return y_pad[:B, :out_dim], z_pad[:B, :hid_dim]


def init_params(key, in_dim, hid_dim, out_dim, dtype=jnp.float32):
    """Mimics nn.Linear's uniform(-1/sqrt(fan_in), 1/sqrt(fan_in)) init."""
    k1, k2, k3, k4 = jax.random.split(key, 4)
    lim1 = 1.0 / jnp.sqrt(in_dim)
    lim2 = 1.0 / jnp.sqrt(hid_dim)
    # stored as (in_features, out_features) == PyTorch weight.T
    w1 = jax.random.uniform(k1, (in_dim, hid_dim), dtype, -lim1, lim1)
    b1 = jax.random.uniform(k2, (1, hid_dim), dtype, -lim1, lim1)
    w2 = jax.random.uniform(k3, (hid_dim, out_dim), dtype, -lim2, lim2)
    b2 = jax.random.uniform(k4, (1, out_dim), dtype, -lim2, lim2)
    return w1, b1, w2, b2


if __name__ == "__main__":
    # NOTE: toy sizes -> launch-overhead dominated, but the kernel is structured
    # (resident or hid-tiled weights, lane-dense 128 padding, cdiv batch grid,
    # megacore-parallel batch axis) so it scales to real widths unchanged.
    B, IN_DIM, HID_DIM, OUT_DIM = 8, 16, 32, 8

    key = jax.random.PRNGKey(0)
    kx, kp = jax.random.split(key)
    x = jax.random.normal(kx, (B, IN_DIM, 1), jnp.float32)  # trailing dim squeezed
    w1, b1, w2, b2 = init_params(kp, IN_DIM, HID_DIM, OUT_DIM)

    # Pad weights ONCE (hoisted out of the per-call path).
    (w1p, b1p, w2p, b2p), (hid_dim, out_dim) = prepare_params(w1, b1, w2, b2)

    y, z = mlp_forward(x, w1p, b1p, w2p, b2p, hid_dim=hid_dim, out_dim=out_dim)
    jax.block_until_ready((y, z))

    # reference check in plain JAX
    x2d = jnp.squeeze(x, axis=-1)
    z_ref = jnp.maximum(x2d @ w1 + b1, 0.0)
    y_ref = z_ref @ w2 + b2
    assert y.shape == (B, OUT_DIM) and z.shape == (B, HID_DIM)
    assert jnp.allclose(z, z_ref, atol=1e-5), "z mismatch"
    assert jnp.allclose(y, y_ref, atol=1e-5), "y mismatch"

    # Exercise the hid-dim-tiled fallback path (used when W1/W2 exceed VMEM).
    y2, z2 = mlp_forward(x, w1p, b1p, w2p, b2p, hid_dim=hid_dim, out_dim=out_dim,
                         force_hid_tiling=True)
    jax.block_until_ready((y2, z2))
    assert jnp.allclose(z2, z_ref, atol=1e-5), "z mismatch (hid-tiled)"
    assert jnp.allclose(y2, y_ref, atol=1e-5), "y mismatch (hid-tiled)"

    # Exercise a multi-step grid with a partial (masked) final batch block.
    B2 = 200
    x_big = jax.random.normal(jax.random.PRNGKey(1), (B2, IN_DIM, 1), jnp.float32)
    y3, z3 = mlp_forward(x_big, w1p, b1p, w2p, b2p, hid_dim=hid_dim,
                         out_dim=out_dim, block_m=128)
    jax.block_until_ready((y3, z3))
    xb2d = jnp.squeeze(x_big, axis=-1)
    z3_ref = jnp.maximum(xb2d @ w1 + b1, 0.0)
    y3_ref = z3_ref @ w2 + b2
    assert jnp.allclose(z3, z3_ref, atol=1e-5), "z mismatch (partial block)"
    assert jnp.allclose(y3, y3_ref, atol=1e-5), "y mismatch (partial block)"

    print("KERNEL_OK")
</pallas_src>

<mosaic_0001>
module attributes {stable_mosaic.version = 11 : i64} {
  func.func @_mlp_resident_kernel(%arg0: i32, %arg1: memref<8x128xf32, #tpu.memory_space<vmem>>, %arg2: memref<128x128xf32, #tpu.memory_space<vmem>>, %arg3: memref<1x128xf32, #tpu.memory_space<vmem>>, %arg4: memref<128x128xf32, #tpu.memory_space<vmem>>, %arg5: memref<1x128xf32, #tpu.memory_space<vmem>>, %arg6: memref<8x128xf32, #tpu.memory_space<vmem>>, %arg7: memref<8x128xf32, #tpu.memory_space<vmem>>) attributes {dimension_semantics = [#tpu.dimension_semantics<parallel>], iteration_bounds = array<i64: 1>, scalar_prefetch = 0 : i64, scratch_operands = 0 : i64, tpu.core_type = #tpu.core_type<tc>, window_params = [{transform_indices = @transform_0, window_bounds = array<i64: 8, 128>}, {pipeline_mode = #tpu.pipeline_mode<synchronous>, transform_indices = @transform_1, window_bounds = array<i64: 128, 128>}, {pipeline_mode = #tpu.pipeline_mode<synchronous>, transform_indices = @transform_2, window_bounds = array<i64: 1, 128>}, {pipeline_mode = #tpu.pipeline_mode<synchronous>, transform_indices = @transform_3, window_bounds = array<i64: 128, 128>}, {pipeline_mode = #tpu.pipeline_mode<synchronous>, transform_indices = @transform_4, window_bounds = array<i64: 1, 128>}, {transform_indices = @transform_5, window_bounds = array<i64: 8, 128>}, {transform_indices = @transform_6, window_bounds = array<i64: 8, 128>}]} {
    %c0 = arith.constant 0 : index
    %c0_0 = arith.constant 0 : index
    %0 = vector.load %arg1[%c0, %c0_0] : memref<8x128xf32, #tpu.memory_space<vmem>>, vector<8x128xf32>
    %c0_1 = arith.constant 0 : index
    %c0_2 = arith.constant 0 : index
    %1 = vector.load %arg2[%c0_1, %c0_2] : memref<128x128xf32, #tpu.memory_space<vmem>>, vector<128x128xf32>
    %cst = arith.constant dense<0.000000e+00> : vector<8x128xf32>
    %2 = tpu.matmul %0, %1, %cst {dimension_numbers = #tpu.dot_dimension_numbers<[1], [0], [0], [1], [0, 0, 1, 1], [], []>} : vector<8x128xf32>, vector<128x128xf32>, vector<8x128xf32> -> vector<8x128xf32>
    %c0_3 = arith.constant 0 : index
    %c0_4 = arith.constant 0 : index
    %3 = vector.load %arg3[%c0_3, %c0_4] : memref<1x128xf32, #tpu.memory_space<vmem>>, vector<1x128xf32>
    %4 = vector.broadcast %3 : vector<1x128xf32> to vector<8x128xf32>
    %5 = arith.addf %2, %4 : vector<8x128xf32>
    %cst_5 = arith.constant 0.000000e+00 : f32
    %6 = vector.broadcast %cst_5 : f32 to vector<8x128xf32>
    %7 = arith.maximumf %5, %6 : vector<8x128xf32>
    %c0_6 = arith.constant 0 : index
    %c0_7 = arith.constant 0 : index
    %8 = vector.load %arg7[%c0_6, %c0_7] : memref<8x128xf32, #tpu.memory_space<vmem>>, vector<8x128xf32>
    tpu.vector_store %arg7[%c0_6, %c0_7], %7 {strides = array<i32>} : memref<8x128xf32, #tpu.memory_space<vmem>>, vector<8x128xf32>,
    %c0_8 = arith.constant 0 : index
    %c0_9 = arith.constant 0 : index
    %9 = vector.load %arg4[%c0_8, %c0_9] : memref<128x128xf32, #tpu.memory_space<vmem>>, vector<128x128xf32>
    %cst_10 = arith.constant dense<0.000000e+00> : vector<8x128xf32>
    %10 = tpu.matmul %7, %9, %cst_10 {dimension_numbers = #tpu.dot_dimension_numbers<[1], [0], [0], [1], [0, 0, 1, 1], [], []>} : vector<8x128xf32>, vector<128x128xf32>, vector<8x128xf32> -> vector<8x128xf32>
    %c0_11 = arith.constant 0 : index
    %c0_12 = arith.constant 0 : index
    %11 = vector.load %arg5[%c0_11, %c0_12] : memref<1x128xf32, #tpu.memory_space<vmem>>, vector<1x128xf32>
    %12 = vector.broadcast %11 : vector<1x128xf32> to vector<8x128xf32>
    %13 = arith.addf %10, %12 : vector<8x128xf32>
    %c0_13 = arith.constant 0 : index
    %c0_14 = arith.constant 0 : index
    %14 = vector.load %arg6[%c0_13, %c0_14] : memref<8x128xf32, #tpu.memory_space<vmem>>, vector<8x128xf32>
    tpu.vector_store %arg6[%c0_13, %c0_14], %13 {strides = array<i32>} : memref<8x128xf32, #tpu.memory_space<vmem>>, vector<8x128xf32>,
    return
  }
  func.func @transform_0(%arg0: i32) -> (i32, i32) {
    %c0_i32 = arith.constant 0 : i32
    %c0_i32_0 = arith.constant 0 : i32
    return %arg0, %c0_i32 : i32, i32
  }
  func.func @transform_1(%arg0: i32) -> (i32, i32) {
    %c0_i32 = arith.constant 0 : i32
    %c0_i32_0 = arith.constant 0 : i32
    %c0_i32_1 = arith.constant 0 : i32
    return %c0_i32, %c0_i32_0 : i32, i32
  }
  func.func @transform_2(%arg0: i32) -> (i32, i32) {
    %c0_i32 = arith.constant 0 : i32
    %c0_i32_0 = arith.constant 0 : i32
    %c0_i32_1 = arith.constant 0 : i32
    return %c0_i32, %c0_i32_0 : i32, i32
  }
  func.func @transform_3(%arg0: i32) -> (i32, i32) {
    %c0_i32 = arith.constant 0 : i32
    %c0_i32_0 = arith.constant 0 : i32
    %c0_i32_1 = arith.constant 0 : i32
    return %c0_i32, %c0_i32_0 : i32, i32
  }
  func.func @transform_4(%arg0: i32) -> (i32, i32) {
    %c0_i32 = arith.constant 0 : i32
    %c0_i32_0 = arith.constant 0 : i32
    %c0_i32_1 = arith.constant 0 : i32
    return %c0_i32, %c0_i32_0 : i32, i32
  }
  func.func @transform_5(%arg0: i32) -> (i32, i32) {
    %c0_i32 = arith.constant 0 : i32
    %c0_i32_0 = arith.constant 0 : i32
    return %arg0, %c0_i32 : i32, i32
  }
  func.func @transform_6(%arg0: i32) -> (i32, i32) {
    %c0_i32 = arith.constant 0 : i32
    %c0_i32_0 = arith.constant 0 : i32
    return %arg0, %c0_i32 : i32, i32
  }
}

</mosaic_0001>

<bundles_post_ra>
// kernel: mlp_forward.1
= control target key start
LH: loop header
LB: loop body
LE: loop exit
PB: predicated region body
PF: predicated region fallthrough
CT: control target
= control target key end

     0   :  { %12 = vsyncpa [#allocation3], 0  ;;  %s648_s0 = inlined_call_operand.vmem [shape: f32[8,128], index: 0, kind: input, shape index: {}]   ;;  %s649_s1 = inlined_call_operand.hbm [shape: f32[128,128], index: 1, kind: input, shape index: {}]   ;;  %s650_s2 = inlined_call_operand.vmem [shape: f32[1,128], index: 2, kind: input, shape index: {}]   ;;  %s651_s3 = inlined_call_operand.hbm [shape: f32[128,128], index: 3, kind: input, shape index: {}]   ;;  %s652_s4 = inlined_call_operand.vmem [shape: f32[1,128], index: 4, kind: input, shape index: {}]   ;;  %s653_s5 = inlined_call_operand.hbm [shape: f32[8,128], index: 5, kind: output, shape index: {0}]   ;;  %s654_s6 = inlined_call_operand.hbm [shape: f32[8,128], index: 6, kind: output, shape index: {1}]  }
   0x1   :  { %13 = vsyncpa [#allocation6], 0 }
   0x2   :  { %14 = vsyncpa [#allocation4], 0 }
   0x3   :  { %15 = vsyncpa [#allocation9], 0  ;;  %s531_s21 = smov [#allocation2]   ;;  %s435_s25 = scalar_lea.hbm %s649_s1, 2048 }
   0x4   :  { %s23_s22 = sshll.u32 %s531_s21, 4  ;;  %p436_p0 = scmp.ne.s32.totalorder %s649_s1, %s435_s25  ;;  %s24_s22 = int_to_ptr.vmem [resolvable:$true] %s23_s22 }
   0x5   :  { %p439_p1 = scmp.lt.u32.totalorder %s435_s25, %s649_s1 }
   0x7   :  { %p441_p2 = pnand %p439_p1, %p436_p0 }
   0x9   :  { %444 = shalt.err (!%p441_p2)
}
   0xa   :  { %s445_s30 = scalar_lea.vmem %s24_s22, 2048  ;;  %p450_p4 = scmp.lt.s32.totalorder %s24_s22, %s24_s22 }
   0xb   :  { %p446_p3 = scmp.ne.s32.totalorder %s24_s22, %s445_s30  ;;  %p451_p5 = scmp.lt.s32.totalorder %s445_s30, %s445_s30 }
   0xd   :  { %p452_p6 = por %p451_p5, %p450_p4 }
   0xf   :  { %p453_p7 = pnand %p452_p6, %p446_p3 }
  0x11   :  { %456 = shalt.err (!%p453_p7)
}
  0x12   :  { %s532_s7 = smov 128   ;;  %s533_s8 = smov 8  }
  0x13   :  { %29 = dma.hbm_to_vmem [thread:$0]  %s649_s1, 2048, %s24_s22, [#allocation3], %s532_s7, %s532_s7, %s533_s8  }
  0x14   :  { %s534_s11 = smov [#allocation5]   ;;  %s457_s15 = scalar_lea.hbm %s651_s3, 2048 }
  0x15   :  { %s37_s12 = sshll.u32 %s534_s11, 4  ;;  %p458_p8 = scmp.ne.s32.totalorder %s651_s3, %s457_s15  ;;  %s38_s12 = int_to_ptr.vmem [resolvable:$true] %s37_s12 }
  0x16   :  { %p461_p9 = scmp.lt.u32.totalorder %s457_s15, %s651_s3 }
  0x18   :  { %p463_p10 = pnand %p461_p9, %p458_p8 }
  0x1a   :  { %466 = shalt.err (!%p463_p10)
}
  0x1b   :  { %s467_s20 = scalar_lea.vmem %s38_s12, 2048  ;;  %p472_p12 = scmp.lt.s32.totalorder %s38_s12, %s38_s12 }
  0x1c   :  { %p468_p11 = scmp.ne.s32.totalorder %s38_s12, %s467_s20  ;;  %p473_p13 = scmp.lt.s32.totalorder %s467_s20, %s467_s20 }
  0x1e   :  { %p474_p0 = por %p473_p13, %p472_p12 }
  0x20   :  { %p475_p1 = pnand %p474_p0, %p468_p11 }
  0x22   :  { %478 = shalt.err (!%p475_p1)
}
  0x23   :  { %43 = dma.hbm_to_vmem [thread:$0]  %s651_s3, 2048, %s38_s12, [#allocation6], %s532_s7, %s532_s7, %s533_s8  }
  0x24   :  { %523 = dma.done.wait [#allocation3], 2048  }
  0x25   :  { %524 = vsyncadd [#allocation3], 4294965248 }
  0x26   :  { %525 = dma.done.wait [#allocation6], 2048  }
  0x27   :  { %526 = vsyncadd [#allocation6], 4294965248  ;;  %v535_v0 = vmov 0.0|0.0   ;;  %vm536_vm0 = vmmov 0   ;;  %v537_v1 = vmov 0.0   ;;  %v53_v2 = vld [vmem:[#allocation2] sm:$0xff] }
  0x28   :  { %378 = vmatprep.subr.bf16.mxu0 %v535_v0  ;;  %340 = vmatprep.mubr.msk.f32.mxu0 %vm536_vm0, %v537_v1  ;;  %v54_v3 = vld [vmem:[#allocation2 + $0x8] sm:$0xff]  ;;  %v55_v4 = vld [vmem:[#allocation2 + $0x10] sm:$0xff]  ;;  %v56_v6 = vld [vmem:[#allocation2 + $0x18] sm:$0xff]  ;;  %s538_s25 = smov [#allocation8]  }
  0x29   :  { %402 = vmatprep.subr.bf16.mxu1 %v535_v0  ;;  %375 = vmatprep.mubr.msk.f32.mxu1 %vm536_vm0, %v537_v1  ;;  %v379_v5 = vpack.c.bf16 %v54_v3, %v53_v2  ;;  %v382_v7 = vpack.c.bf16 %v56_v6, %v55_v4  ;;  %v57_v8 = vld [vmem:[#allocation2 + $0x20] sm:$0xff]  ;;  %v58_v9 = vld [vmem:[#allocation2 + $0x28] sm:$0xff]  ;;  %v150_v12 = vld [vmem:[#allocation5 + $0x10] sm:$0xff] }
  0x2a   :  { %v148_v10 = vld [vmem:[#allocation5] sm:$0xff]  ;;  %v149_v11 = vld [vmem:[#allocation5 + $0x8] sm:$0xff]  ;;  %v151_v13 = vld [vmem:[#allocation5 + $0x18] sm:$0xff]  ;;  %v385_v14 = vpack.c.bf16 %v58_v9, %v57_v8 }
  0x2b   :  { %380 = vmatpush3.bf16.msra.mxu0 %v379_v5  ;;  %v403_v15 = vpack.c.bf16 %v149_v11, %v148_v10  ;;  %v59_v16 = vld [vmem:[#allocation2 + $0x30] sm:$0xff]  ;;  %v60_v17 = vld [vmem:[#allocation2 + $0x38] sm:$0xff]  ;;  %v406_v18 = vpack.c.bf16 %v151_v13, %v150_v12  ;;  %v152_v19 = vld [vmem:[#allocation5 + $0x20] sm:$0xff] }
  0x2c   :  { %381 = vmatprep.subr.bf16.mxu0 %v535_v0  ;;  %v153_v20 = vld [vmem:[#allocation5 + $0x28] sm:$0xff]  ;;  %v388_v21 = vpack.c.bf16 %v60_v17, %v59_v16  ;;  %v61_v22 = vld [vmem:[#allocation2 + $0x40] sm:$0xff]  ;;  %v154_v25 = vld [vmem:[#allocation5 + $0x30] sm:$0xff] }
  0x2d   :  { %404 = vmatpush3.bf16.msra.mxu1 %v403_v15  ;;  %v62_v23 = vld [vmem:[#allocation2 + $0x48] sm:$0xff]  ;;  %v409_v24 = vpack.c.bf16 %v153_v20, %v152_v19  ;;  %v155_v26 = vld [vmem:[#allocation5 + $0x38] sm:$0xff]  ;;  %v63_v28 = vld [vmem:[#allocation2 + $0x50] sm:$0xff] }
  0x2e   :  { %405 = vmatprep.subr.bf16.mxu1 %v535_v0  ;;  %v391_v27 = vpack.c.bf16 %v62_v23, %v61_v22  ;;  %v64_v29 = vld [vmem:[#allocation2 + $0x58] sm:$0xff]  ;;  %v412_v30 = vpack.c.bf16 %v155_v26, %v154_v25  ;;  %v156_v31 = vld [vmem:[#allocation5 + $0x40] sm:$0xff]  ;;  %v157_v32 = vld [vmem:[#allocation5 + $0x48] sm:$0xff] }
  0x2f   :  { %383 = vmatpush3.bf16.msra.mxu0 %v382_v7  ;;  %v394_v33 = vpack.c.bf16 %v64_v29, %v63_v28  ;;  %v65_v34 = vld [vmem:[#allocation2 + $0x60] sm:$0xff]  ;;  %v66_v35 = vld [vmem:[#allocation2 + $0x68] sm:$0xff]  ;;  %v415_v36 = vpack.c.bf16 %v157_v32, %v156_v31  ;;  %v158_v37 = vld [vmem:[#allocation5 + $0x50] sm:$0xff] }
  0x30   :  { %384 = vmatprep.subr.bf16.mxu0 %v535_v0  ;;  %v159_v38 = vld [vmem:[#allocation5 + $0x58] sm:$0xff]  ;;  %v397_v39 = vpack.c.bf16 %v66_v35, %v65_v34  ;;  %v67_v40 = vld [vmem:[#allocation2 + $0x70] sm:$0xff]  ;;  %v160_v43 = vld [vmem:[#allocation5 + $0x60] sm:$0xff] }
  0x31   :  { %407 = vmatpush3.bf16.msra.mxu1 %v406_v18  ;;  %v68_v41 = vld [vmem:[#allocation2 + $0x78] sm:$0xff]  ;;  %v418_v42 = vpack.c.bf16 %v159_v38, %v158_v37  ;;  %v161_v44 = vld [vmem:[#allocation5 + $0x68] sm:$0xff]  ;;  %v52_v47 = vld [vmem:[%s648_s0] sm:$0xff]  ;;  %s258_s0 = sshll.u32 %s538_s25, 4  ;;  %s259_s0 = int_to_ptr.vmem [resolvable:$true] %s258_s0 }
  0x32   :  { %408 = vmatprep.subr.bf16.mxu1 %v535_v0  ;;  %v400_v45 = vpack.c.bf16 %v68_v41, %v67_v40  ;;  %v421_v46 = vpack.c.bf16 %v161_v44, %v160_v43  ;;  %v162_v48 = vld [vmem:[#allocation5 + $0x70] sm:$0xff]  ;;  %v163_v49 = vld [vmem:[#allocation5 + $0x78] sm:$0xff]  ;;  %v272_v51 = vld [vmem:[%s650_s2] ss:$0 sm:$0xff]  ;;  %s479_s26 = scalar_lea.vmem %s259_s0, 128  ;;  %p484_p3 = scmp.lt.s32.totalorder %s259_s0, %s259_s0 }
  0x33   :  { %386 = vmatpush3.bf16.msra.mxu0 %v385_v14  ;;  %v424_v50 = vpack.c.bf16 %v163_v49, %v162_v48  ;;  %p480_p2 = scmp.ne.s32.totalorder %s259_s0, %s479_s26  ;;  %p485_p4 = scmp.lt.s32.totalorder %s479_s26, %s479_s26 }
  0x34   :  { %387 = vmatprep.subr.bf16.mxu0 %v535_v0 }
  0x35   :  { %410 = vmatpush3.bf16.msra.mxu1 %v409_v24  ;;  %p486_p5 = por %p485_p4, %p484_p3 }
  0x36   :  { %411 = vmatprep.subr.bf16.mxu1 %v535_v0 }
  0x37   :  { %389 = vmatpush3.bf16.msra.mxu0 %v388_v21  ;;  %p487_p6 = pnand %p486_p5, %p480_p2 }
  0x38   :  { %390 = vmatprep.subr.bf16.mxu0 %v535_v0 }
  0x39   :  { %413 = vmatpush3.bf16.msra.mxu1 %v412_v30 }
  0x3a   :  { %414 = vmatprep.subr.bf16.mxu1 %v535_v0 }
  0x3b   :  { %392 = vmatpush3.bf16.msra.mxu0 %v391_v27 }
  0x3c   :  { %393 = vmatprep.subr.bf16.mxu0 %v535_v0 }
  0x3d   :  { %416 = vmatpush3.bf16.msra.mxu1 %v415_v36 }
  0x3e   :  { %417 = vmatprep.subr.bf16.mxu1 %v535_v0 }
  0x3f   :  { %395 = vmatpush3.bf16.msra.mxu0 %v394_v33 }
  0x40   :  { %396 = vmatprep.subr.bf16.mxu0 %v535_v0 }
  0x41   :  { %419 = vmatpush3.bf16.msra.mxu1 %v418_v42 }
  0x42   :  { %420 = vmatprep.subr.bf16.mxu1 %v535_v0 }
  0x43   :  { %398 = vmatpush3.bf16.msra.mxu0 %v397_v39 }
  0x44   :  { %399 = vmatprep.subr.bf16.mxu0 %v535_v0 }
  0x45   :  { %422 = vmatpush3.bf16.msra.mxu1 %v421_v46 }
  0x46   :  { %423 = vmatprep.subr.bf16.mxu1 %v535_v0 }
  0x47   :  { %401 = vmatpush3.bf16.msra.mxu0 %v400_v45 }
  0x49   :  { %425 = vmatpush3.bf16.msra.mxu1 %v424_v50 }
  0x4a   :  { %341 = vmatmul.mubr.f32.vlgmr.msra.gmra.mrb[0].mxu0 %v52_v47 }
 0x11d   :  { %v142_v52 = vpop.f32.mrb[0].mxu0 }
 0x11e   :  { %v143_v53 = vadd.f32 %v272_v51, %v142_v52  ;;  %v342_v54 = vpop.f32.mrb[1].mxu0 }
 0x120   :  { %v146_v55 = vmax.f32 %v143_v53, 0.0 }
 0x122   :  { %147 = vst [vmem:[#allocation8] sm:$0xff] %v146_v55  ;;  %376 = vmatmul.mubr.f32.vlgmr.msra.gmra.mrb[0].mxu1 %v146_v55 }
 0x123   :  { %490 = shalt.err (!%p487_p6)
}
 0x124   :  { %s491_s2 = scalar_lea.hbm %s654_s6, 128 }
 0x125   :  { %p492_p7 = scmp.ne.s32.totalorder %s654_s6, %s491_s2  ;;  %p495_p8 = scmp.lt.u32.totalorder %s491_s2, %s654_s6 }
 0x127   :  { %p497_p9 = pnand %p495_p8, %p492_p7 }
 0x129   :  { %500 = shalt.err (!%p497_p9)
}
 0x12a   :  { %261 = dma.vmem_to_hbm [thread:$0]  %s259_s0, 128, %s654_s6, [#allocation9]   ;;  %v273_v56 = vld [vmem:[%s652_s4] ss:$0 sm:$0xff] }
 0x12b   :  { %s539_s13 = smov [#allocation7]  }
 0x12c   :  { %s248_s14 = sshll.u32 %s539_s13, 4  ;;  %s249_s14 = int_to_ptr.vmem [resolvable:$true] %s248_s14 }
 0x12d   :  { %s501_s15 = scalar_lea.vmem %s249_s14, 128  ;;  %p506_p11 = scmp.lt.s32.totalorder %s249_s14, %s249_s14 }
 0x12e   :  { %p502_p10 = scmp.ne.s32.totalorder %s249_s14, %s501_s15  ;;  %p507_p12 = scmp.lt.s32.totalorder %s501_s15, %s501_s15 }
 0x130   :  { %p508_p13 = por %p507_p12, %p506_p11 }
 0x132   :  { %p509_p0 = pnand %p508_p13, %p502_p10 }
 0x1f5   :  { %v237_v57 = vpop.f32.mrb[0].mxu1 }
 0x1f6   :  { %v238_v58 = vadd.f32 %v273_v56, %v237_v57  ;;  %v377_v59 = vpop.f32.mrb[1].mxu1 }
 0x1f8   :  { %241 = vst [vmem:[#allocation7] sm:$0xff] %v238_v58 }
 0x1f9   :  { %512 = shalt.err (!%p509_p0)
}
 0x1fa   :  { %s513_s17 = scalar_lea.hbm %s653_s5, 128 }
 0x1fb   :  { %p514_p1 = scmp.ne.s32.totalorder %s653_s5, %s513_s17  ;;  %p517_p2 = scmp.lt.u32.totalorder %s513_s17, %s653_s5 }
 0x1fd   :  { %p519_p3 = pnand %p517_p2, %p514_p1 }
 0x1ff   :  { %522 = shalt.err (!%p519_p3)
}
 0x200   :  { %251 = dma.vmem_to_hbm [thread:$0]  %s249_s14, 128, %s653_s5, [#allocation4]  }
 0x201   :  { %527 = dma.done.wait [#allocation4], 128  }
 0x202   :  { %528 = vsyncadd [#allocation4], 4294967168 }
 0x203   :  { %529 = dma.done.wait [#allocation9], 128  }
 0x204   :  { %530 = vsyncadd [#allocation9], 4294967168 }
 0x205   :  { %268 = vsyncpa [#allocation3], 1 }
 0x206   :  { %269 = vsyncpa [#allocation6], 1 }
 0x207   :  { %270 = vsyncpa [#allocation4], 1 }
 0x208   :  { %271 = vsyncpa [#allocation9], 1 }

</bundles_post_ra>
